<compile_context>
chip_gen: v5e
topology: v5e:2x2
jax: 0.10.0
libtpu: 0.0.40
codegen_flags: <defaults>
</compile_context>

<pallas_src>
import functools
import math

import jax
import jax.numpy as jnp
from jax.experimental import pallas as pl
from jax.experimental.pallas import tpu as pltpu


# Finite stand-in for -inf used to disable padded vocab columns (exp underflows
# to 0, never wins the running max, and avoids inf-inf NaNs).
_NEG_BIG = -1e30


def _round_up(x, m):
    return (x + m - 1) // m * m


def _vmem_capacity_bytes():
    try:
        return int(pltpu.get_tpu_info().vmem_capacity_bytes)
    except Exception:
        return 64 * 1024 * 1024  # conservative (v7x per-TensorCore VMEM)


def _head_kernel(x_ref, w_ref, b_ref, o_ref, strip, m_sc, l_sc,
                 *, tv, vocab, n_vocab_tiles):
    """Grid (row_tiles, vocab_tiles), vocab innermost ('arbitrary').

    Per vocab tile j: logits = x_tile @ w_tile^T + b_tile (f32 accumulation on
    the MXU), stash the tile in a VMEM-resident f32 strip, update the per-row
    running max / sum-exp.  After the last vocab tile, write the normalized
    log-softmax strip to the (row-tile resident) output block once.
    """
    j = pl.program_id(1)

    @pl.when(j == 0)
    def _():
        m_sc[...] = jnp.full_like(m_sc, -jnp.inf)
        l_sc[...] = jnp.zeros_like(l_sc)

    # (tm, d) . (tv, d) contracted on d -> (tm, tv); torch weight layout, no
    # transpose needed.
    logits = jax.lax.dot_general(
        x_ref[...], w_ref[...],
        dimension_numbers=(((1,), (1,)), ((), ())),
        preferred_element_type=jnp.float32,
    ) + b_ref[...].astype(jnp.float32)

    if vocab % tv != 0:
        # Ragged last vocab tile: columns >= vocab come from Pallas edge-block
        # padding (unspecified values) -> force to a huge negative so they never
        # win the max and their exp() underflows to 0.
        col = j * tv + jax.lax.broadcasted_iota(jnp.int32, logits.shape, 1)
        logits = jnp.where(col < vocab, logits, _NEG_BIG)

    strip[j] = logits  # VMEM-resident row strip; no HBM logits round trip.

    m_prev = m_sc[...]
    m_new = jnp.maximum(m_prev, jnp.max(logits, axis=-1, keepdims=True))
    alpha = jnp.exp(m_prev - m_new)          # 0 on the first tile (m_prev=-inf)
    l_sc[...] = alpha * l_sc[...] + jnp.sum(
        jnp.exp(logits - m_new), axis=-1, keepdims=True)
    m_sc[...] = m_new

    @pl.when(j == n_vocab_tiles - 1)
    def _():
        lse = m_sc[...] + jnp.log(l_sc[...])
        # Static unrolled copy-out: log_softmax = logits - logsumexp.
        for jj in range(n_vocab_tiles):
            lo = jj * tv
            hi = min(vocab, lo + tv)
            o_ref[:, lo:hi] = (strip[jj, :, :hi - lo] - lse).astype(o_ref.dtype)


def classification_head(x, weight, bias, *, row_tile=512, vocab_tile=512,
                        mxu_dtype=None):
    """log_softmax(x @ weight.T + bias, axis=-1).

    x: (..., d_model); weight: (vocab, d_model) (torch Linear layout);
    bias: (vocab,).  Returns shape (..., vocab) in x.dtype.
    mxu_dtype: optionally cast x/weight (e.g. jnp.bfloat16) for the matmul;
    accumulation and softmax math stay f32.
    """
    d_model = x.shape[-1]
    vocab, wd = weight.shape
    assert wd == d_model, "weight must be (vocab, d_model)"
    lead_shape = x.shape[:-1]
    n_rows = int(math.prod(lead_shape))
    out_dtype = x.dtype

    if n_rows == 0:  # degenerate empty batch: skip the pallas_call entirely
        return jnp.zeros((*lead_shape, vocab), out_dtype)

    x2 = x.reshape(n_rows, d_model)
    if mxu_dtype is not None and x2.dtype != mxu_dtype:
        x2 = x2.astype(mxu_dtype)
        weight = weight.astype(mxu_dtype)
    b2 = bias.reshape(1, vocab)

    # ---- generation-aware VMEM budget & tile selection ----
    x_bytes = x2.dtype.itemsize
    w_bytes = weight.dtype.itemsize
    o_bytes = jnp.dtype(out_dtype).itemsize

    cap = _vmem_capacity_bytes()
    vmem_limit = min(int(cap * 0.75), 100 * 1024 * 1024)
    budget = int(vmem_limit * 0.85)

    tv = min(vocab_tile, _round_up(vocab, 128))          # lane-dense tiles
    tm = _round_up(min(row_tile, _round_up(n_rows, 16)), 16)

    def est(tm_, tv_):
        vp = _round_up(vocab, tv_)
        return (2 * tm_ * d_model * x_bytes              # x blocks (dbl-buffered)
                + 2 * tv_ * d_model * w_bytes            # weight blocks
                + 2 * tv_ * 4                            # bias blocks
                + 2 * tm_ * vocab * o_bytes              # output block
                + tm_ * vp * 4                           # f32 logits strip
                + 4 * tm_ * 4)                           # m / l scratch

    while est(tm, tv) > budget and tm > 16:
        tm = max(16, tm // 2)
    while est(tm, tv) > budget and tv > 128:
        tv = max(128, tv // 2)

    n_row_tiles = pl.cdiv(n_rows, tm)
    n_vocab_tiles = pl.cdiv(vocab, tv)

    kernel = functools.partial(_head_kernel, tv=tv, vocab=vocab,
                               n_vocab_tiles=n_vocab_tiles)

    out = pl.pallas_call(
        kernel,
        out_shape=jax.ShapeDtypeStruct((n_rows, vocab), out_dtype),
        grid_spec=pltpu.PrefetchScalarGridSpec(
            num_scalar_prefetch=0,
            grid=(n_row_tiles, n_vocab_tiles),
            in_specs=[
                pl.BlockSpec((tm, d_model), lambda i, j: (i, 0)),
                pl.BlockSpec((tv, d_model), lambda i, j: (j, 0)),
                pl.BlockSpec((1, tv), lambda i, j: (0, j)),
            ],
            out_specs=pl.BlockSpec((tm, vocab), lambda i, j: (i, 0)),
            scratch_shapes=[
                pltpu.VMEM((n_vocab_tiles, tm, tv), jnp.float32),  # logits strip
                pltpu.VMEM((tm, 1), jnp.float32),                  # running max
                pltpu.VMEM((tm, 1), jnp.float32),                  # running sumexp
            ],
        ),
        compiler_params=pltpu.CompilerParams(
            dimension_semantics=("parallel", "arbitrary"),
            vmem_limit_bytes=vmem_limit,
        ),
    )(x2, weight, b2)

    return out.reshape(*lead_shape, vocab)


if __name__ == "__main__":
    # Small shapes consistent with the module's forward.
    batch, seq, d_model, vocab_size = 2, 8, 32, 16

    key = jax.random.PRNGKey(0)
    kx, kw, kb = jax.random.split(key, 3)

    # Deterministic parameter init (matches torch.nn.Linear init distribution).
    bound = 1.0 / math.sqrt(d_model)
    weight = jax.random.uniform(
        kw, (vocab_size, d_model), minval=-bound, maxval=bound, dtype=jnp.float32
    )
    bias = jax.random.uniform(
        kb, (vocab_size,), minval=-bound, maxval=bound, dtype=jnp.float32
    )
    x = jax.random.normal(kx, (batch, seq, d_model), dtype=jnp.float32)

    # Reference in plain JAX.
    ref = jax.nn.log_softmax(x @ weight.T + bias, axis=-1)

    # Default (full-precision) path.
    out = jax.block_until_ready(classification_head(x, weight, bias))
    assert out.shape == (batch, seq, vocab_size)
    assert jnp.allclose(out, ref, atol=1e-5, rtol=1e-5), "f32 path mismatch"

    # Optional bf16-MXU fast path (halves DMA bytes, ~3-4x MXU throughput);
    # accumulation/softmax stay f32, so only the logits term loses precision.
    out_bf16 = jax.block_until_ready(
        classification_head(x, weight, bias, mxu_dtype=jnp.bfloat16))
    assert out_bf16.shape == (batch, seq, vocab_size)
    assert jnp.allclose(out_bf16, ref, atol=5e-2, rtol=5e-2), "bf16 path mismatch"

    print("KERNEL_OK")
</pallas_src>

<mosaic_0001>
module attributes {stable_mosaic.version = 11 : i64} {
  func.func @_head_kernel(%arg0: i32, %arg1: i32, %arg2: memref<16x32xf32, #tpu.memory_space<vmem>>, %arg3: memref<128x32xf32, #tpu.memory_space<vmem>>, %arg4: memref<1x128xf32, #tpu.memory_space<vmem>>, %arg5: memref<16x16xf32, #tpu.memory_space<vmem>>, %arg6: memref<1x16x128xf32, #tpu.memory_space<vmem>>, %arg7: memref<16x1xf32, #tpu.memory_space<vmem>>, %arg8: memref<16x1xf32, #tpu.memory_space<vmem>>) attributes {dimension_semantics = [#tpu.dimension_semantics<parallel>, #tpu.dimension_semantics<arbitrary>], iteration_bounds = array<i64: 1, 1>, scalar_prefetch = 0 : i64, scratch_operands = 3 : i64, tpu.core_type = #tpu.core_type<tc>, window_params = [{transform_indices = @transform_0, window_bounds = array<i64: 16, 32>}, {transform_indices = @transform_1, window_bounds = array<i64: 128, 32>}, {transform_indices = @transform_2, window_bounds = array<i64: 1, 128>}, {transform_indices = @transform_3, window_bounds = array<i64: 16, 16>}]} {
    %c0_i32 = arith.constant 0 : i32
    %0 = arith.cmpi eq, %arg1, %c0_i32 : i32
    %1 = arith.extui %0 : i1 to i32
    %c0_i32_0 = arith.constant 0 : i32
    %2 = arith.cmpi ne, %1, %c0_i32_0 : i32
    scf.if %2 {
      %cst_21 = arith.constant 0xFF800000 : f32
      %40 = vector.broadcast %cst_21 : f32 to vector<16x1xf32>
      %c0_22 = arith.constant 0 : index
      %c0_23 = arith.constant 0 : index
      %41 = vector.load %arg7[%c0_22, %c0_23] : memref<16x1xf32, #tpu.memory_space<vmem>>, vector<16x1xf32>
      tpu.vector_store %arg7[%c0_22, %c0_23], %40 {strides = array<i32>} : memref<16x1xf32, #tpu.memory_space<vmem>>, vector<16x1xf32>,
      %cst_24 = arith.constant 0.000000e+00 : f32
      %42 = vector.broadcast %cst_24 : f32 to vector<16x1xf32>
      %c0_25 = arith.constant 0 : index
      %c0_26 = arith.constant 0 : index
      %43 = vector.load %arg8[%c0_25, %c0_26] : memref<16x1xf32, #tpu.memory_space<vmem>>, vector<16x1xf32>
      tpu.vector_store %arg8[%c0_25, %c0_26], %42 {strides = array<i32>} : memref<16x1xf32, #tpu.memory_space<vmem>>, vector<16x1xf32>,
    } else {
    }
    %c0 = arith.constant 0 : index
    %c0_1 = arith.constant 0 : index
    %3 = vector.load %arg2[%c0, %c0_1] : memref<16x32xf32, #tpu.memory_space<vmem>>, vector<16x32xf32>
    %c0_2 = arith.constant 0 : index
    %c0_3 = arith.constant 0 : index
    %4 = vector.load %arg3[%c0_2, %c0_3] : memref<128x32xf32, #tpu.memory_space<vmem>>, vector<128x32xf32>
    %cst = arith.constant dense<0.000000e+00> : vector<16x128xf32>
    %5 = tpu.matmul %3, %4, %cst {dimension_numbers = #tpu.dot_dimension_numbers<[1], [1], [0], [0], [0, 0, 1, 0], [], []>} : vector<16x32xf32>, vector<128x32xf32>, vector<16x128xf32> -> vector<16x128xf32>
    %c0_4 = arith.constant 0 : index
    %c0_5 = arith.constant 0 : index
    %6 = vector.load %arg4[%c0_4, %c0_5] : memref<1x128xf32, #tpu.memory_space<vmem>>, vector<1x128xf32>
    %7 = vector.broadcast %6 : vector<1x128xf32> to vector<16x128xf32>
    %8 = arith.addf %5, %7 : vector<16x128xf32>
    %c128_i32 = arith.constant 128 : i32
    %9 = arith.muli %arg1, %c128_i32 : i32
    %10 = tpu.iota {dimensions = array<i32: 1>} : vector<16x128xi32>
    %11 = vector.broadcast %9 : i32 to vector<16x128xi32>
    %12 = arith.addi %11, %10 : vector<16x128xi32>
    %c16_i32 = arith.constant 16 : i32
    %13 = vector.broadcast %c16_i32 : i32 to vector<16x128xi32>
    %14 = arith.cmpi slt, %12, %13 : vector<16x128xi32>
    %cst_6 = arith.constant -1.000000e+30 : f32
    %15 = vector.broadcast %cst_6 : f32 to vector<16x128xf32>
    %16 = arith.select %14, %8, %15 : vector<16x128xi1>, vector<16x128xf32>
    %17 = arith.index_cast %arg1 : i32 to index
    %c0_7 = arith.constant 0 : index
    %c0_8 = arith.constant 0 : index
    %18 = vector.load %arg6[%17, %c0_7, %c0_8] : memref<1x16x128xf32, #tpu.memory_space<vmem>>, vector<1x16x128xf32>
    %19 = vector.shape_cast %18 : vector<1x16x128xf32> to vector<16x128xf32>
    %20 = vector.shape_cast %16 : vector<16x128xf32> to vector<1x16x128xf32>
    tpu.vector_store %arg6[%17, %c0_7, %c0_8], %20 {strides = array<i32>} : memref<1x16x128xf32, #tpu.memory_space<vmem>>, vector<1x16x128xf32>,
    %c0_9 = arith.constant 0 : index
    %c0_10 = arith.constant 0 : index
    %21 = vector.load %arg7[%c0_9, %c0_10] : memref<16x1xf32, #tpu.memory_space<vmem>>, vector<16x1xf32>
    %cst_11 = arith.constant dense<0xFF800000> : vector<16xf32>
    %22 = vector.multi_reduction <maximumf>, %16, %cst_11 [1] : vector<16x128xf32> to vector<16xf32>
    %23 = vector.shape_cast %22 : vector<16xf32> to vector<16x1xf32>
    %24 = arith.maximumf %21, %23 : vector<16x1xf32>
    %25 = arith.subf %21, %24 : vector<16x1xf32>
    %26 = math.exp %25 : vector<16x1xf32>
    %c0_12 = arith.constant 0 : index
    %c0_13 = arith.constant 0 : index
    %27 = vector.load %arg8[%c0_12, %c0_13] : memref<16x1xf32, #tpu.memory_space<vmem>>, vector<16x1xf32>
    %28 = arith.mulf %26, %27 : vector<16x1xf32>
    %29 = vector.broadcast %24 : vector<16x1xf32> to vector<16x128xf32>
    %30 = arith.subf %16, %29 : vector<16x128xf32>
    %31 = math.exp %30 : vector<16x128xf32>
    %cst_14 = arith.constant dense<0.000000e+00> : vector<16xf32>
    %32 = vector.multi_reduction <add>, %31, %cst_14 [1] : vector<16x128xf32> to vector<16xf32>
    %33 = vector.shape_cast %32 : vector<16xf32> to vector<16x1xf32>
    %34 = arith.addf %28, %33 : vector<16x1xf32>
    %c0_15 = arith.constant 0 : index
    %c0_16 = arith.constant 0 : index
    %35 = vector.load %arg8[%c0_15, %c0_16] : memref<16x1xf32, #tpu.memory_space<vmem>>, vector<16x1xf32>
    tpu.vector_store %arg8[%c0_15, %c0_16], %34 {strides = array<i32>} : memref<16x1xf32, #tpu.memory_space<vmem>>, vector<16x1xf32>,
    %c0_17 = arith.constant 0 : index
    %c0_18 = arith.constant 0 : index
    %36 = vector.load %arg7[%c0_17, %c0_18] : memref<16x1xf32, #tpu.memory_space<vmem>>, vector<16x1xf32>
    tpu.vector_store %arg7[%c0_17, %c0_18], %24 {strides = array<i32>} : memref<16x1xf32, #tpu.memory_space<vmem>>, vector<16x1xf32>,
    %c0_i32_19 = arith.constant 0 : i32
    %37 = arith.cmpi eq, %arg1, %c0_i32_19 : i32
    %38 = arith.extui %37 : i1 to i32
    %c0_i32_20 = arith.constant 0 : i32
    %39 = arith.cmpi ne, %38, %c0_i32_20 : i32
    scf.if %39 {
      %c0_21 = arith.constant 0 : index
      %c0_22 = arith.constant 0 : index
      %40 = vector.load %arg7[%c0_21, %c0_22] : memref<16x1xf32, #tpu.memory_space<vmem>>, vector<16x1xf32>
      %c0_23 = arith.constant 0 : index
      %c0_24 = arith.constant 0 : index
      %41 = vector.load %arg8[%c0_23, %c0_24] : memref<16x1xf32, #tpu.memory_space<vmem>>, vector<16x1xf32>
      %42 = math.log %41 : vector<16x1xf32>
      %43 = arith.addf %40, %42 : vector<16x1xf32>
      %c0_25 = arith.constant 0 : index
      %c0_26 = arith.constant 0 : index
      %c0_27 = arith.constant 0 : index
      %44 = vector.load %arg6[%c0_25, %c0_26, %c0_27] : memref<1x16x128xf32, #tpu.memory_space<vmem>>, vector<1x16x16xf32>
      %45 = vector.shape_cast %44 : vector<1x16x16xf32> to vector<16x16xf32>
      %46 = vector.broadcast %43 : vector<16x1xf32> to vector<16x16xf32>
      %47 = arith.subf %45, %46 : vector<16x16xf32>
      %c0_28 = arith.constant 0 : index
      %c0_29 = arith.constant 0 : index
      %48 = vector.load %arg5[%c0_28, %c0_29] : memref<16x16xf32, #tpu.memory_space<vmem>>, vector<16x16xf32>
      tpu.vector_store %arg5[%c0_28, %c0_29], %47 {strides = array<i32>} : memref<16x16xf32, #tpu.memory_space<vmem>>, vector<16x16xf32>,
    } else {
    }
    return
  }
  func.func @transform_0(%arg0: i32, %arg1: i32) -> (i32, i32) {
    %c0_i32 = arith.constant 0 : i32
    %c0_i32_0 = arith.constant 0 : i32
    return %arg0, %c0_i32 : i32, i32
  }
  func.func @transform_1(%arg0: i32, %arg1: i32) -> (i32, i32) {
    %c0_i32 = arith.constant 0 : i32
    %c0_i32_0 = arith.constant 0 : i32
    return %arg1, %c0_i32 : i32, i32
  }
  func.func @transform_2(%arg0: i32, %arg1: i32) -> (i32, i32) {
    %c0_i32 = arith.constant 0 : i32
    %c0_i32_0 = arith.constant 0 : i32
    return %c0_i32, %arg1 : i32, i32
  }
  func.func @transform_3(%arg0: i32, %arg1: i32) -> (i32, i32) {
    %c0_i32 = arith.constant 0 : i32
    %c0_i32_0 = arith.constant 0 : i32
    return %arg0, %c0_i32 : i32, i32
  }
}

</mosaic_0001>

<bundles_post_ra>
// kernel: tpu_custom_call.1
= control target key start
LH: loop header
LB: loop body
LE: loop exit
PB: predicated region body
PF: predicated region fallthrough
CT: control target
= control target key end

     0   :  { %8 = vsyncpa [#allocation6], 0  ;;  %s499_s0 = inlined_call_operand.hbm [shape: f32[16,32], index: 0, kind: input, shape index: {}]   ;;  %s500_s1 = inlined_call_operand.hbm [shape: f32[16,32], index: 1, kind: input, shape index: {}]   ;;  %s501_s2 = inlined_call_operand.vmem [shape: f32[1,16], index: 2, kind: input, shape index: {}]   ;;  %s502_s3 = inlined_call_operand.hbm [shape: f32[16,16], index: 3, kind: output, shape index: {}]  }
   0x1   :  { %9 = vsyncpa [#allocation9], 0 }
   0x2   :  { %10 = vsyncpa [#allocation7], 0  ;;  %s15_s14 = sshll.u32 %s499_s0, 4  ;;  %s398_s15 = smov [#allocation5]   ;;  %s16_s14 = int_to_ptr.hbm [resolvable:$true] %s15_s14 }
   0x3   :  { %s17_s16 = sshll.u32 %s398_s15, 4  ;;  %s399_s17 = smov 128   ;;  %s18_s16 = int_to_ptr.vmem [resolvable:$true] %s17_s16 }
   0x4   :  { %s400_s18 = smov 8  }
   0x5   :  { %23 = dma.hbm_to_vmem [thread:$0]  %s16_s14, 256, %s18_s16, [#allocation6], %s399_s17, %s399_s17, %s400_s18  }
   0x6   :  { %27 = vsyncadd [#allocation9], 1792  ;;  %s28_s21 = sshll.u32 %s500_s1, 4  ;;  %s401_s22 = smov [#allocation8]   ;;  %s29_s21 = int_to_ptr.hbm [resolvable:$true] %s28_s21 }
   0x7   :  { %s30_s23 = sshll.u32 %s401_s22, 4  ;;  %s31_s23 = int_to_ptr.vmem [resolvable:$true] %s30_s23 }
   0x8   :  { %36 = dma.hbm_to_vmem [thread:$0]  %s29_s21, 256, %s31_s23, [#allocation9], %s399_s17, %s399_s17, %s400_s18  }
   0x9   :  { %392 = dma.done.wait [#allocation6], 256  }
   0xa   :  { %393 = vsyncadd [#allocation6], 4294967040 }
   0xb   :  { %394 = dma.done.wait [#allocation9], 2048  }
   0xc   :  { %395 = vsyncadd [#allocation9], 4294965248  ;;  %vm78_vm0 = vcmask 261120   ;;  %v73_v0 = vld [vmem:[#allocation8 + $0x78] sm:$0xff]  ;;  %v72_v1 = vld [vmem:[#allocation8 + $0x70] sm:$0xff]  ;;  %vm51_vm1 = vcmask 7168   ;;  %v157_v19 = vlaneseq }
   0xd   :  { %263 = vmatpush.xpose.msk.msra.mxu0 %vm78_vm0, %v73_v0  ;;  %281 = vmatpush.xpose.msk.msra.mxu1 %vm78_vm0, %v73_v0  ;;  %v71_v2 = vld [vmem:[#allocation8 + $0x68] sm:$0xff]  ;;  %v70_v3 = vld [vmem:[#allocation8 + $0x60] sm:$0xff]  ;;  %v69_v4 = vld [vmem:[#allocation8 + $0x58] sm:$0xff]  ;;  %v402_v18 = vmov -inf   ;;  %v403_v28 = vmov 0   ;;  %v404_v29 = vmov 0.0  }
   0xe   :  { %v68_v5 = vld [vmem:[#allocation8 + $0x50] sm:$0xff]  ;;  %v67_v6 = vld [vmem:[#allocation8 + $0x48] sm:$0xff]  ;;  %v66_v7 = vld [vmem:[#allocation8 + $0x40] sm:$0xff]  ;;  %52 = vst.msk [vmem:[#allocation3] sm:$0xff] %vm51_vm1, %v402_v18  ;;  %v158_v20 = vand.u32 127, %v157_v19  ;;  %305 = vset.pattern.permute.xlu1 %v403_v28  ;;  %306 = vset.pattern.permute.xlu0 %v403_v28  ;;  %vm240_vm3 = vcmask 130048  }
   0xf   :  { %v65_v8 = vld [vmem:[#allocation8 + $0x38] sm:$0xff]  ;;  %v64_v9 = vld [vmem:[#allocation8 + $0x30] sm:$0xff]  ;;  %v63_v10 = vld [vmem:[#allocation8 + $0x28] sm:$0xff]  ;;  %53 = vst.msk [vmem:[#allocation3 + $0x8] sm:$0xff] %vm51_vm1, %v402_v18  ;;  %s249_s27 = sshll.u32 %s502_s3, 4  ;;  %s250_s27 = int_to_ptr.hbm [resolvable:$true] %s249_s27 }
  0x10   :  { %v62_v11 = vld [vmem:[#allocation8 + $0x20] sm:$0xff]  ;;  %v61_v12 = vld [vmem:[#allocation8 + $0x18] sm:$0xff]  ;;  %v60_v13 = vld [vmem:[#allocation8 + $0x10] sm:$0xff]  ;;  %vm161_vm2 = vcmp.lt.s32.totalorder %v158_v20, 16  ;;  %54 = vst.msk [vmem:[#allocation4] sm:$0xff] %vm51_vm1, %v404_v29 }
  0x11   :  { %264 = vmatpush.xpose.msk.msra.mxu0 %vm78_vm0, %v72_v1  ;;  %282 = vmatpush.xpose.msk.msra.mxu1 %vm78_vm0, %v72_v1  ;;  %v59_v14 = vld [vmem:[#allocation8 + $0x8] sm:$0xff]  ;;  %v58_v15 = vld [vmem:[#allocation8] sm:$0xff]  ;;  %v56_v16 = vld [vmem:[#allocation5] sm:$0xff]  ;;  %55 = vst.msk [vmem:[#allocation4 + $0x8] sm:$0xff] %vm51_vm1, %v404_v29 }
  0x12   :  { %v57_v17 = vld [vmem:[#allocation5 + $0x8] sm:$0xff]  ;;  %v307_v21 = vld [vmem:[%s501_s2] ss:$0 sm:$0xff]  ;;  %s405_s2 = smov [#allocation10]  }
  0x13   :  { %s247_s24 = sshll.u32 %s405_s2, 4  ;;  %s248_s24 = int_to_ptr.vmem [resolvable:$true] %s247_s24 }
  0x15   :  { %265 = vmatpush.xpose.msk.msra.mxu0 %vm78_vm0, %v71_v2  ;;  %283 = vmatpush.xpose.msk.msra.mxu1 %vm78_vm0, %v71_v2  ;;  %v168_v30 = vld [vmem:[#allocation3] sm:$0xff] }
  0x16   :  { %v169_v34 = vld [vmem:[#allocation3 + $0x8] sm:$0xff] }
  0x17   :  { %v182_v49 = vld [vmem:[#allocation4] sm:$0xff] }
  0x18   :  { %v183_v54 = vld [vmem:[#allocation4 + $0x8] sm:$0xff] }
  0x19   :  { %266 = vmatpush.xpose.msk.msra.mxu0 %vm78_vm0, %v70_v3  ;;  %284 = vmatpush.xpose.msk.msra.mxu1 %vm78_vm0, %v70_v3 }
  0x1d   :  { %267 = vmatpush.xpose.msk.msra.mxu0 %vm78_vm0, %v69_v4  ;;  %285 = vmatpush.xpose.msk.msra.mxu1 %vm78_vm0, %v69_v4 }
  0x21   :  { %268 = vmatpush.xpose.msk.msra.mxu0 %vm78_vm0, %v68_v5  ;;  %286 = vmatpush.xpose.msk.msra.mxu1 %vm78_vm0, %v68_v5 }
  0x25   :  { %269 = vmatpush.xpose.msk.msra.mxu0 %vm78_vm0, %v67_v6  ;;  %287 = vmatpush.xpose.msk.msra.mxu1 %vm78_vm0, %v67_v6 }
  0x29   :  { %270 = vmatpush.xpose.msk.msra.mxu0 %vm78_vm0, %v66_v7  ;;  %288 = vmatpush.xpose.msk.msra.mxu1 %vm78_vm0, %v66_v7 }
  0x2d   :  { %271 = vmatpush.xpose.msk.msra.mxu0 %vm78_vm0, %v65_v8  ;;  %289 = vmatpush.xpose.msk.msra.mxu1 %vm78_vm0, %v65_v8 }
  0x31   :  { %272 = vmatpush.xpose.msk.msra.mxu0 %vm78_vm0, %v64_v9  ;;  %290 = vmatpush.xpose.msk.msra.mxu1 %vm78_vm0, %v64_v9 }
  0x35   :  { %273 = vmatpush.xpose.msk.msra.mxu0 %vm78_vm0, %v63_v10  ;;  %291 = vmatpush.xpose.msk.msra.mxu1 %vm78_vm0, %v63_v10 }
  0x39   :  { %274 = vmatpush.xpose.msk.msra.mxu0 %vm78_vm0, %v62_v11  ;;  %292 = vmatpush.xpose.msk.msra.mxu1 %vm78_vm0, %v62_v11 }
  0x3d   :  { %275 = vmatpush.xpose.msk.msra.mxu0 %vm78_vm0, %v61_v12  ;;  %293 = vmatpush.xpose.msk.msra.mxu1 %vm78_vm0, %v61_v12 }
  0x41   :  { %276 = vmatpush.xpose.msk.msra.mxu0 %vm78_vm0, %v60_v13  ;;  %294 = vmatpush.xpose.msk.msra.mxu1 %vm78_vm0, %v60_v13 }
  0x45   :  { %277 = vmatpush.xpose.msk.msra.mxu0 %vm78_vm0, %v59_v14  ;;  %295 = vmatpush.xpose.msk.msra.mxu1 %vm78_vm0, %v59_v14 }
  0x49   :  { %278 = vmatpush.xpose.msk.msra.mxu0 %vm78_vm0, %v58_v15  ;;  %296 = vmatpush.xpose.msk.msra.mxu1 %vm78_vm0, %v58_v15 }
  0x4c   :  { %279 = vmatmul.msk.f32.vlgmr.msra.gmra.mxu0 %vm78_vm0, %v56_v16  ;;  %280 = vmatmul.msk.f32.vlgmr.msra.gmra.mxu1 %vm78_vm0, %v57_v17 }
  0xc9   :  { %v150_v22 = vpop.f32.mrf.mxu0  ;;  %v153_v24 = vpop.f32.mrf.mxu1 }
  0xca   :  { %v151_v23 = vadd.f32 %v307_v21, %v150_v22  ;;  %v154_v26 = vadd.f32 %v307_v21, %v153_v24 }
  0xcc   :  { %v477_v25 = vsel %vm161_vm2, %v151_v23, -1e+30  ;;  %v480_v27 = vsel %vm161_vm2, %v154_v26, -1e+30 }
  0xcd   :  { %170 = vmax.xlane.f32.xlu0 %v477_v25 }
  0xd5   :  { %172 = vmax.xlane.f32.xlu0 %v480_v27 }
 0x140   :  { %v171_v31 = vpop.xlane.xlu0 %170 }
 0x141   :  { %v174_v32 = vmax.f32 %v168_v30, %v171_v31 }
 0x143   :  { %v176_v33 = vsub.f32 %v168_v30, %v174_v32  ;;  %211 = vst.msk [vmem:[#allocation3] sm:$0xff] %vm51_vm1, %v174_v32  ;;  %188 = vperm.xlu1 %305, %v174_v32  }
 0x145   :  { %v178_v46 = vmul.f32 1.442695, %v176_v33 }
 0x148   :  { %v173_v35 = vpop.xlane.xlu0 %172 }
 0x149   :  { %v175_v36 = vmax.f32 %v169_v34, %v173_v35 }
 0x14a   :  { %v216_v62 = vld [vmem:[#allocation3] sm:$0xff] }
 0x14b   :  { %v177_v37 = vsub.f32 %v169_v34, %v175_v36  ;;  %212 = vst.msk [vmem:[#allocation3 + $0x8] sm:$0xff] %vm51_vm1, %v175_v36  ;;  %193 = vperm.xlu1 %305, %v175_v36  }
 0x14d   :  { %v180_v47 = vmul.f32 1.442695, %v177_v37 }
 0x152   :  { %v217_v2 = vld [vmem:[#allocation3 + $0x8] sm:$0xff] }
 0x1b5   :  { %v189_v38 = vpop.permute.xlu1 %188 }
 0x1b6   :  { %v196_v39 = vsub.f32 %v477_v25, %v189_v38 }
 0x1b8   :  { %v198_v40 = vmul.f32 1.442695, %v196_v39 }
 0x1ba   :  { %308 = vpow2.f32 %v198_v40 }
 0x1bd   :  { %v194_v41 = vpop.permute.xlu1 %193 }
 0x1be   :  { %v197_v42 = vsub.f32 %v480_v27, %v194_v41 }
 0x1c0   :  { %v309_v43 = vpop.eup %308  ;;  %v200_v44 = vmul.f32 1.442695, %v197_v42 }
 0x1c1   :  { %202 = vadd.xlane.f32.xlu2 %v309_v43 }
 0x1c2   :  { %310 = vpow2.f32 %v200_v44 }
 0x1c3   :  { %312 = vpow2.f32 %v178_v46 }
 0x1c4   :  { %314 = vpow2.f32 %v180_v47 }
 0x1c8   :  { %v311_v45 = vpop.eup %310 }
 0x1c9   :  { %204 = vadd.xlane.f32.xlu2 %v311_v45  ;;  %v313_v48 = vpop.eup %312 }
 0x1ca   :  { %v184_v50 = vmul.f32 %v313_v48, %v182_v49  ;;  %v315_v53 = vpop.eup %314 }
 0x1cb   :  { %v185_v55 = vmul.f32 %v315_v53, %v183_v54 }
 0x234   :  { %v203_v51 = vpop.xlane.xlu2 %202 }
 0x235   :  { %v206_v52 = vadd.f32 %v203_v51, %v184_v50 }
 0x237   :  { %209 = vst.msk [vmem:[#allocation4] sm:$0xff] %vm51_vm1, %v206_v52 }
 0x23c   :  { %v205_v56 = vpop.xlane.xlu2 %204 }
 0x23d   :  { %v207_v57 = vadd.f32 %v205_v56, %v185_v55 }
 0x23e   :  { %v218_v58 = vld [vmem:[#allocation4] sm:$0xff] }
 0x23f   :  { %210 = vst.msk [vmem:[#allocation4 + $0x8] sm:$0xff] %vm51_vm1, %v207_v57  ;;  %316 = vlog2.f32 %v218_v58 }
 0x245   :  { %v317_v59 = vpop.eup %316 }
 0x246   :  { %v221_v60 = vmul.f32 0.6931472, %v317_v59  ;;  %v219_v61 = vld [vmem:[#allocation4 + $0x8] sm:$0xff] }
 0x247   :  { %318 = vlog2.f32 %v219_v61 }
 0x248   :  { %v224_v63 = vadd.f32 %v221_v60, %v216_v62 }
 0x24a   :  { %230 = vperm.xlu0 %306, %v224_v63  }
 0x24d   :  { %v319_v0 = vpop.eup %318 }
 0x24e   :  { %v223_v1 = vmul.f32 0.6931472, %v319_v0 }
 0x250   :  { %v225_v3 = vadd.f32 %v223_v1, %v217_v2 }
 0x252   :  { %235 = vperm.xlu1 %305, %v225_v3  }
 0x2bc   :  { %v231_v4 = vpop.permute.xlu0 %230 }
 0x2bd   :  { %v238_v5 = vsub.f32 %v477_v25, %v231_v4 }
 0x2bf   :  { %241 = vst.msk [vmem:[#allocation10] sm:$0xff] %vm240_vm3, %v238_v5 }
 0x2c4   :  { %v236_v6 = vpop.permute.xlu1 %235 }
 0x2c5   :  { %v239_v7 = vsub.f32 %v480_v27, %v236_v6 }
 0x2c7   :  { %242 = vst.msk [vmem:[#allocation10 + $0x8] sm:$0xff] %vm240_vm3, %v239_v7 }
 0x2c8   :  { %255 = dma.vmem_to_hbm [thread:$0]  %s248_s24, 256, %s250_s27, [#allocation7], %s399_s17, %s399_s17, %s400_s18  }
 0x2c9   :  { %396 = dma.done.wait [#allocation7], 256  }
 0x2ca   :  { %397 = vsyncadd [#allocation7], 4294967040 }
 0x2cb   :  { %260 = vsyncpa [#allocation6], 1 }
 0x2cc   :  { %261 = vsyncpa [#allocation9], 1 }
 0x2cd   :  { %262 = vsyncpa [#allocation7], 1 }

</bundles_post_ra>
